<compile_context>
chip_gen: v5e
topology: v5e:2x2
jax: 0.10.0
libtpu: 0.0.40
codegen_flags: <defaults>
</compile_context>

<pallas_src>
import functools

import jax
import jax.numpy as jnp
from jax.experimental import pallas as pl
from jax.experimental.pallas import tpu as pltpu


def _round_up(x, m):
    return ((x + m - 1) // m) * m


def _pick_tile(aligned, max_tile, align):
    """Largest multiple of `align` that divides `aligned` and is <= max_tile."""
    t = min(max_tile, aligned)
    t = max(align, (t // align) * align)
    while aligned % t != 0:
        t -= align
    return t


# ---------------------------------------------------------------------------
# Kernels
# ---------------------------------------------------------------------------
def _linear_kernel_single(x_ref, w_ref, b_ref, o_ref, *, leaky):
    # Whole K in one tile: single MXU pass, fused bias + activation.
    acc = jnp.dot(x_ref[...], w_ref[...], preferred_element_type=jnp.float32)
    y = acc + b_ref[...]
    if leaky:
        y = jnp.maximum(y, 0.1 * y)
    o_ref[...] = y


def _linear_kernel_ksplit(x_ref, w_ref, b_ref, o_ref, *, leaky):
    # grid = (M//tm, N//tn, K//tk); K is the reduction axis (last, "arbitrary").
    # The f32 output block is the accumulator (resident across K) -> no scratch.
    k = pl.program_id(2)

    @pl.when(k == 0)
    def _():
        o_ref[...] = jnp.zeros_like(o_ref)

    o_ref[...] += jnp.dot(x_ref[...], w_ref[...],
                          preferred_element_type=jnp.float32)

    @pl.when(k == pl.num_programs(2) - 1)
    def _():
        y = o_ref[...] + b_ref[...]
        if leaky:
            y = jnp.maximum(y, 0.1 * y)
        o_ref[...] = y


# ---------------------------------------------------------------------------
# Host-side wrapper
# ---------------------------------------------------------------------------
_VMEM_BLOCK_BUDGET = 20 * 1024 * 1024   # keeps tiles safe on v7x (64 MiB/TC)


def linear_forward(x, w_pad, shift_pad, *, leaky, out_features, max_tk=None):
    """x: [M, K] f32; w_pad: [Kp, Np] bf16 (pre-folded, pre-padded);
    shift_pad: [1, Np] f32  ->  [M, out_features] f32."""
    M, K = x.shape
    Kp, Np = w_pad.shape
    N = out_features
    assert K <= Kp and N <= Np, "weight / input feature mismatch"

    Mp = _round_up(M, 16)

    # Pad + cast the activation only (weight/bias already prepared at init).
    if (Mp, Kp) == (M, K):
        xp = x.astype(jnp.bfloat16)
    else:
        xp = jnp.pad(x, ((0, Mp - M), (0, Kp - K))).astype(jnp.bfloat16)

    # ---- tile selection: divisors of the hardware-aligned shapes ----------
    tm = _pick_tile(Mp, 256, 16)

    max_tn = 512
    if Np >= 256:
        # Give the two v7x TensorCores at least 2 parallel grid steps.
        max_tn = min(max_tn, Np // 2)
    tn = _pick_tile(Np, max_tn, 128)

    def vmem_est(tk_):
        # double-buffered bf16 inputs + f32 output + shift vector
        return (2 * tm * tk_ * 2 + 2 * tk_ * tn * 2
                + 2 * tn * 4 + 2 * tm * tn * 4)

    if max_tk is not None:
        tk = _pick_tile(Kp, max_tk, 128)
    elif vmem_est(Kp) <= _VMEM_BLOCK_BUDGET:
        tk = Kp                      # collapse K: single pass, no reduction loop
    else:
        per_k = 4 * (tm + tn)
        fixed = 2 * tn * 4 + 2 * tm * tn * 4
        cap = max(128, ((_VMEM_BLOCK_BUDGET - fixed) // per_k) // 128 * 128)
        tk = _pick_tile(Kp, cap, 128)

    grid_m, grid_n, grid_k = Mp // tm, Np // tn, Kp // tk
    k_split = grid_k > 1

    vmem_limit = int(min(48 * 1024 * 1024,
                         max(2 * vmem_est(tk), 16 * 1024 * 1024)))

    if k_split:
        grid = (grid_m, grid_n, grid_k)
        in_specs = [
            pl.BlockSpec((tm, tk), lambda i, j, k: (i, k)),
            pl.BlockSpec((tk, tn), lambda i, j, k: (k, j)),
            pl.BlockSpec((1, tn), lambda i, j, k: (0, j)),
        ]
        out_spec = pl.BlockSpec((tm, tn), lambda i, j, k: (i, j))
        dims = ("parallel", "parallel", "arbitrary")
        kernel = functools.partial(_linear_kernel_ksplit, leaky=leaky)
    else:
        grid = (grid_m, grid_n)
        in_specs = [
            pl.BlockSpec((tm, tk), lambda i, j: (i, 0)),
            pl.BlockSpec((tk, tn), lambda i, j: (0, j)),
            pl.BlockSpec((1, tn), lambda i, j: (0, j)),
        ]
        out_spec = pl.BlockSpec((tm, tn), lambda i, j: (i, j))
        dims = ("parallel", "parallel")
        kernel = functools.partial(_linear_kernel_single, leaky=leaky)

    out = pl.pallas_call(
        kernel,
        out_shape=jax.ShapeDtypeStruct((Mp, Np), jnp.float32),
        grid_spec=pltpu.PrefetchScalarGridSpec(
            num_scalar_prefetch=0,
            grid=grid,
            in_specs=in_specs,
            out_specs=out_spec,
        ),
        compiler_params=pltpu.CompilerParams(
            dimension_semantics=dims,
            vmem_limit_bytes=vmem_limit,
        ),
    )(xp, w_pad, shift_pad)

    # Slice only the dims that were actually padded.
    if Mp != M and Np != N:
        return out[:M, :N]
    if Mp != M:
        return out[:M]
    if Np != N:
        return out[:, :N]
    return out


# ---------------------------------------------------------------------------
# Module
# ---------------------------------------------------------------------------
class LinearPallas:
    """JAX/Pallas analogue of the PyTorch `Linear` module (deterministic init)."""

    def __init__(self, in_features, out_features, act, bn=False, key=None):
        if act not in ("linear", "leaky"):
            raise ValueError("attr::`act` must be `linear` or `leaky`")
        self.leaky = act == "leaky"
        self.in_features = in_features
        self.out_features = out_features

        key = jax.random.PRNGKey(42) if key is None else key
        kw, kb, kg, kbeta = jax.random.split(key, 4)

        bound = 1.0 / (in_features ** 0.5)
        # nn.Linear-style uniform init (deterministic given the key)
        weight = jax.random.uniform(
            kw, (out_features, in_features), jnp.float32, -bound, bound
        )
        w_t = weight.T  # [K, N]

        if bn:
            # TODO(synk): training-mode BatchNorm2d batch statistics are not
            # reproduced; only the eval-mode running-stat fold is implemented.
            gamma = 1.0 + 0.1 * jax.random.normal(kg, (out_features,), jnp.float32)
            beta = 0.1 * jax.random.normal(kbeta, (out_features,), jnp.float32)
            running_mean = 0.05 * jnp.arange(out_features, dtype=jnp.float32)
            running_var = jnp.ones((out_features,), jnp.float32) * 1.5
            eps = 1e-5
            scale = gamma / jnp.sqrt(running_var + eps)
            shift = beta - running_mean * scale
            # Fold the BN scale into the weight once -> no scale path in-kernel.
            w_t = w_t * scale[None, :]
        else:
            shift = jax.random.uniform(
                kb, (out_features,), jnp.float32, -bound, bound
            )

        Kp = _round_up(in_features, 128)
        Np = _round_up(out_features, 128)
        # Pre-pad + pre-cast ONCE at init (saves a weight-sized HBM pass/call).
        self.w_pad = jnp.pad(
            w_t, ((0, Kp - in_features), (0, Np - out_features))
        ).astype(jnp.bfloat16)
        self.shift_pad = jnp.pad(
            shift.reshape(1, -1).astype(jnp.float32),
            ((0, 0), (0, Np - out_features)),
        )

    def __call__(self, x, max_tk=None):
        return linear_forward(
            x,
            self.w_pad,
            self.shift_pad,
            leaky=self.leaky,
            out_features=self.out_features,
            max_tk=max_tk,
        )

    def reference(self, x):
        # Mirror the kernel's bf16 rounding (scale fold already in w_pad) so
        # the check isolates the kernel itself (f32 accumulation both paths).
        xr = x.astype(jnp.bfloat16).astype(jnp.float32)
        wr = self.w_pad[: self.in_features, : self.out_features].astype(jnp.float32)
        y = xr @ wr + self.shift_pad[:, : self.out_features]
        if self.leaky:
            y = jnp.maximum(y, 0.1 * y)
        return y


if __name__ == "__main__":
    key = jax.random.PRNGKey(0)
    kx1, kx2, kx3, kx4, km1, km2, km3, km4 = jax.random.split(key, 8)

    # Case 1: plain Linear (+bias) + LeakyReLU — single MXU pass, no padding.
    B1, IN1, OUT1 = 8, 128, 128
    x1 = jax.random.normal(kx1, (B1, IN1), jnp.float32)
    mod1 = LinearPallas(IN1, OUT1, act="leaky", bn=False, key=km1)
    y1 = jax.block_until_ready(mod1(x1))
    assert y1.shape == (B1, OUT1)
    assert jnp.allclose(y1, mod1.reference(x1), atol=2e-3, rtol=2e-3)

    # Case 2: Linear (no bias) + folded eval-mode BN + linear act; N split in 2.
    B2, IN2, OUT2 = 8, 128, 256
    x2 = jax.random.normal(kx2, (B2, IN2), jnp.float32)
    mod2 = LinearPallas(IN2, OUT2, act="linear", bn=True, key=km2)
    y2 = jax.block_until_ready(mod2(x2))
    assert y2.shape == (B2, OUT2)
    assert jnp.allclose(y2, mod2.reference(x2), atol=2e-3, rtol=2e-3)

    # Case 3: ragged shapes (M/N padding) + large K collapsed into one pass.
    B3, IN3, OUT3 = 5, 1536, 96
    x3 = jax.random.normal(kx3, (B3, IN3), jnp.float32)
    mod3 = LinearPallas(IN3, OUT3, act="leaky", bn=True, key=km3)
    y3 = jax.block_until_ready(mod3(x3))
    assert y3.shape == (B3, OUT3)
    assert jnp.allclose(y3, mod3.reference(x3), atol=2e-3, rtol=2e-3)

    # Case 4: forced K-split path (tk=128 -> 4 reduction steps, acc in o_ref).
    B4, IN4, OUT4 = 8, 512, 128
    x4 = jax.random.normal(kx4, (B4, IN4), jnp.float32)
    mod4 = LinearPallas(IN4, OUT4, act="linear", bn=False, key=km4)
    y4 = jax.block_until_ready(mod4(x4, max_tk=128))
    assert y4.shape == (B4, OUT4)
    assert jnp.allclose(y4, mod4.reference(x4), atol=2e-3, rtol=2e-3)

    print("KERNEL_OK")
</pallas_src>

<mosaic_0001>
module attributes {stable_mosaic.version = 11 : i64} {
  func.func @_linear_kernel_single(%arg0: i32, %arg1: i32, %arg2: memref<16x128xbf16, #tpu.memory_space<vmem>>, %arg3: memref<128x128xbf16, #tpu.memory_space<vmem>>, %arg4: memref<1x128xf32, #tpu.memory_space<vmem>>, %arg5: memref<16x128xf32, #tpu.memory_space<vmem>>) attributes {dimension_semantics = [#tpu.dimension_semantics<parallel>, #tpu.dimension_semantics<parallel>], iteration_bounds = array<i64: 1, 1>, scalar_prefetch = 0 : i64, scratch_operands = 0 : i64, tpu.core_type = #tpu.core_type<tc>, window_params = [{transform_indices = @transform_0, window_bounds = array<i64: 16, 128>}, {transform_indices = @transform_1, window_bounds = array<i64: 128, 128>}, {transform_indices = @transform_2, window_bounds = array<i64: 1, 128>}, {transform_indices = @transform_3, window_bounds = array<i64: 16, 128>}]} {
    %c0 = arith.constant 0 : index
    %c0_0 = arith.constant 0 : index
    %0 = vector.load %arg2[%c0, %c0_0] : memref<16x128xbf16, #tpu.memory_space<vmem>>, vector<16x128xbf16>
    %c0_1 = arith.constant 0 : index
    %c0_2 = arith.constant 0 : index
    %1 = vector.load %arg3[%c0_1, %c0_2] : memref<128x128xbf16, #tpu.memory_space<vmem>>, vector<128x128xbf16>
    %cst = arith.constant dense<0.000000e+00> : vector<16x128xf32>
    %2 = tpu.matmul %0, %1, %cst {dimension_numbers = #tpu.dot_dimension_numbers<[1], [0], [0], [1], [0, 0, 1, 1], [], []>} : vector<16x128xbf16>, vector<128x128xbf16>, vector<16x128xf32> -> vector<16x128xf32>
    %c0_3 = arith.constant 0 : index
    %c0_4 = arith.constant 0 : index
    %3 = vector.load %arg4[%c0_3, %c0_4] : memref<1x128xf32, #tpu.memory_space<vmem>>, vector<1x128xf32>
    %4 = vector.broadcast %3 : vector<1x128xf32> to vector<16x128xf32>
    %5 = arith.addf %2, %4 : vector<16x128xf32>
    %cst_5 = arith.constant 1.000000e-01 : f32
    %6 = vector.broadcast %cst_5 : f32 to vector<16x128xf32>
    %7 = arith.mulf %6, %5 : vector<16x128xf32>
    %8 = arith.maximumf %5, %7 : vector<16x128xf32>
    %c0_6 = arith.constant 0 : index
    %c0_7 = arith.constant 0 : index
    %9 = vector.load %arg5[%c0_6, %c0_7] : memref<16x128xf32, #tpu.memory_space<vmem>>, vector<16x128xf32>
    tpu.vector_store %arg5[%c0_6, %c0_7], %8 {strides = array<i32>} : memref<16x128xf32, #tpu.memory_space<vmem>>, vector<16x128xf32>,
    return
  }
  func.func @transform_0(%arg0: i32, %arg1: i32) -> (i32, i32) {
    %c0_i32 = arith.constant 0 : i32
    %c0_i32_0 = arith.constant 0 : i32
    return %arg0, %c0_i32 : i32, i32
  }
  func.func @transform_1(%arg0: i32, %arg1: i32) -> (i32, i32) {
    %c0_i32 = arith.constant 0 : i32
    %c0_i32_0 = arith.constant 0 : i32
    return %c0_i32, %arg1 : i32, i32
  }
  func.func @transform_2(%arg0: i32, %arg1: i32) -> (i32, i32) {
    %c0_i32 = arith.constant 0 : i32
    %c0_i32_0 = arith.constant 0 : i32
    return %c0_i32, %arg1 : i32, i32
  }
  func.func @transform_3(%arg0: i32, %arg1: i32) -> (i32, i32) {
    %c0_i32 = arith.constant 0 : i32
    return %arg0, %arg1 : i32, i32
  }
}

</mosaic_0001>

<bundles_post_ra>
// kernel: tpu_custom_call.1
= control target key start
LH: loop header
LB: loop body
LE: loop exit
PB: predicated region body
PF: predicated region fallthrough
CT: control target
= control target key end

     0   :  { %8 = vsyncpa [#allocation3], 0  ;;  %s333_s0 = inlined_call_operand.hbm [shape: bf16[16,128], index: 0, kind: input, shape index: {}]   ;;  %s334_s1 = inlined_call_operand.hbm [shape: bf16[128,128], index: 1, kind: input, shape index: {}]   ;;  %s335_s2 = inlined_call_operand.vmem [shape: f32[1,128], index: 2, kind: input, shape index: {}]   ;;  %s336_s3 = inlined_call_operand.hbm [shape: f32[16,128], index: 3, kind: output, shape index: {}]  }
   0x1   :  { %9 = vsyncpa [#allocation6], 0 }
   0x2   :  { %10 = vsyncpa [#allocation4], 0  ;;  %s15_s14 = sshll.u32 %s333_s0, 4  ;;  %s294_s15 = smov [#allocation2]   ;;  %s16_s14 = int_to_ptr.hbm [resolvable:$true] %s15_s14 }
   0x3   :  { %s17_s16 = sshll.u32 %s294_s15, 4  ;;  %s28_s19 = sshll.u32 %s334_s1, 4  ;;  %s18_s16 = int_to_ptr.vmem [resolvable:$true] %s17_s16  ;;  %s29_s19 = int_to_ptr.hbm [resolvable:$true] %s28_s19 }
   0x4   :  { %s295_s20 = smov 64   ;;  %s296_s21 = smov 4  }
   0x5   :  { %23 = dma.hbm_to_vmem [thread:$0]  %s16_s14, 128, %s18_s16, [#allocation3], %s295_s20, %s295_s20, %s296_s21  }
   0x6   :  { %s297_s22 = smov [#allocation5]  }
   0x7   :  { %s30_s23 = sshll.u32 %s297_s22, 4  ;;  %s31_s23 = int_to_ptr.vmem [resolvable:$true] %s30_s23 }
   0x8   :  { %36 = dma.hbm_to_vmem [thread:$0]  %s29_s19, 1024, %s31_s23, [#allocation6], %s295_s20, %s295_s20, %s296_s21  }
   0x9   :  { %288 = dma.done.wait [#allocation3], 128  }
   0xa   :  { %289 = vsyncadd [#allocation3], 4294967168 }
   0xb   :  { %290 = dma.done.wait [#allocation6], 1024  }
   0xc   :  { %291 = vsyncadd [#allocation6], 4294966272  ;;  %v207_v0 = vld [vmem:[#allocation5 + $0x38] sm:$0xff]  ;;  %v206_v1 = vld [vmem:[#allocation5 + $0x30] sm:$0xff]  ;;  %s298_s24 = smov [#allocation7]   ;;  %s149_s28 = sshll.u32 %s336_s3, 4  ;;  %s150_s28 = int_to_ptr.hbm [resolvable:$true] %s149_s28 }
   0xd   :  { %123 = vmatpush.bf16.msra.mxu0 %v207_v0  ;;  %v205_v2 = vld [vmem:[#allocation5 + $0x28] sm:$0xff]  ;;  %v204_v3 = vld [vmem:[#allocation5 + $0x20] sm:$0xff]  ;;  %v203_v4 = vld [vmem:[#allocation5 + $0x18] sm:$0xff]  ;;  %s147_s25 = sshll.u32 %s298_s24, 4  ;;  %s299_s29 = smov 128   ;;  %s148_s25 = int_to_ptr.vmem [resolvable:$true] %s147_s25 }
   0xe   :  { %v202_v5 = vld [vmem:[#allocation5 + $0x10] sm:$0xff]  ;;  %v201_v6 = vld [vmem:[#allocation5 + $0x8] sm:$0xff]  ;;  %v200_v7 = vld [vmem:[#allocation5] sm:$0xff] }
   0xf   :  { %v199_v8 = vld [vmem:[#allocation2] sm:$0xff] }
  0x10   :  { %v215_v9 = vld [vmem:[%s335_s2] ss:$0 sm:$0xff]  ;;  %s300_s2 = smov 8  }
  0x11   :  { %124 = vmatpush.bf16.msra.mxu0 %v206_v1 }
  0x15   :  { %125 = vmatpush.bf16.msra.mxu0 %v205_v2 }
  0x19   :  { %126 = vmatpush.bf16.msra.mxu0 %v204_v3 }
  0x1d   :  { %127 = vmatpush.bf16.msra.mxu0 %v203_v4 }
  0x21   :  { %128 = vmatpush.bf16.msra.mxu0 %v202_v5 }
  0x25   :  { %129 = vmatpush.bf16.msra.mxu0 %v201_v6 }
  0x29   :  { %130 = vmatpush.bf16.msra.mxu0 %v200_v7 }
  0x2c   :  { %131 = vmatmul.bf16.vlgmr.msra.gmra.mxu0 %v199_v8 }
  0xa9   :  { %v132_v10 = vpop.f32.mrf.mxu0 }
  0xaa   :  { %v133_v11 = vadd.f32 %v215_v9, %v132_v10 }
  0xac   :  { %v137_v12 = vmul.f32 0.1, %v133_v11 }
  0xae   :  { %v139_v13 = vmax.f32 %v133_v11, %v137_v12 }
  0xb0   :  { %141 = vst [vmem:[#allocation7] sm:$0xff] %v139_v13 }
  0xb1   :  { %v134_v14 = vpop.f32.mrf.mxu0 }
  0xb2   :  { %v135_v15 = vadd.f32 %v215_v9, %v134_v14 }
  0xb4   :  { %v138_v16 = vmul.f32 0.1, %v135_v15 }
  0xb6   :  { %v140_v17 = vmax.f32 %v135_v15, %v138_v16 }
  0xb8   :  { %142 = vst [vmem:[#allocation7 + $0x8] sm:$0xff] %v140_v17 }
  0xb9   :  { %155 = dma.vmem_to_hbm [thread:$0]  %s148_s25, 256, %s150_s28, [#allocation4], %s299_s29, %s299_s29, %s300_s2  }
  0xba   :  { %292 = dma.done.wait [#allocation4], 256  }
  0xbb   :  { %293 = vsyncadd [#allocation4], 4294967040 }
  0xbc   :  { %160 = vsyncpa [#allocation3], 1 }
  0xbd   :  { %161 = vsyncpa [#allocation6], 1 }
  0xbe   :  { %162 = vsyncpa [#allocation4], 1 }

</bundles_post_ra>
